<compile_context>
chip_gen: v6e
topology: v6e:2x2x1
jax: 0.10.0
libtpu: 0.0.40
codegen_flags: <defaults>
</compile_context>

<pallas_src>
import functools

import jax
import jax.numpy as jnp
from jax.experimental import pallas as pl
from jax.experimental.pallas import tpu as pltpu


def _coord_attn_kernel(x_ref, p_ref, eh_ref, ew_ref, w1_ref, b1_ref,
                       whw_ref, bhw_ref, out_ref, *, nb, H, W, Cout):
    # x_ref block: (nb, C, H*W) — lane-dense (H*W on the lane axis).
    P = p_ref[...]        # (H*W, H+W)   pooling + concat matrix
    Eh = eh_ref[...]      # (H, H*W)     gate-H broadcast matrix (0/1)
    Ew = ew_ref[...]      # (W, H*W)     gate-W broadcast matrix (0/1)
    w1 = w1_ref[...]      # (mip, C)     conv1 with eval-mode BN folded in
    b1 = b1_ref[...]      # (mip, 1)
    whw = whw_ref[...]    # (2*Cout, mip)  conv_h / conv_w stacked
    bhw = bhw_ref[...]    # (2*Cout, 1)

    for b in range(nb):   # nb is a small static int -> unrolled
        x2 = x_ref[b]                                                # (C, H*W)
        # avg-pool over W, avg-pool over H, concat  ->  one MXU matmul
        y = jnp.dot(x2, P, preferred_element_type=jnp.float32)       # (C, H+W)
        # 1x1 conv + folded BatchNorm + ReLU
        z = jnp.dot(w1, y, preferred_element_type=jnp.float32) + b1  # (mip, H+W)
        z = jnp.maximum(z, 0.0)
        # fused conv_h / conv_w + sigmoid gates
        a = jax.nn.sigmoid(
            jnp.dot(whw, z, preferred_element_type=jnp.float32) + bhw)  # (2Cout, H+W)
        a_h = a[:Cout, :H]                                           # (Cout, H)
        a_w = a[Cout:, H:]                                           # (Cout, W)
        # broadcast gates to (Cout, H*W) on the MXU (no XLU relayouts)
        gh = jnp.dot(a_h, Eh, preferred_element_type=jnp.float32)    # (Cout, H*W)
        gw = jnp.dot(a_w, Ew, preferred_element_type=jnp.float32)    # (Cout, H*W)
        out_ref[b] = (x2 * gh * gw).astype(out_ref.dtype)


def _pick_images_per_block(N, img_bytes, budget_bytes=1 << 20, max_nb=8):
    """Largest divisor of N (<= max_nb) whose block stays under the budget."""
    nb = 1
    for cand in range(2, min(N, max_nb) + 1):
        if N % cand == 0 and cand * img_bytes <= budget_bytes:
            nb = cand
    return nb


def coordinate_attention(x, params):
    """x: (N, C, H, W); params: raw (un-folded) module parameters."""
    N, C, H, W = x.shape
    eps = params.get("eps", 1e-5)
    w1, b1 = params["w1"], params["b1"]
    gamma, beta = params["gamma"], params["beta"]
    mean, var = params["running_mean"], params["running_var"]
    wh, bh, ww, bw = params["wh"], params["bh"], params["ww"], params["bw"]

    mip = w1.shape[0]
    Cout = wh.shape[0]
    assert Cout == C, "identity * a_h * a_w requires out_channels == in_channels"

    # ---- fold eval-mode BatchNorm into conv1 (exact) ----
    # TODO(synk): training-mode BatchNorm (batch statistics) is not folded;
    # eval-mode (running stats) is assumed, matching inference semantics.
    bn_scale = gamma / jnp.sqrt(var + eps)                       # (mip, 1)
    bn_shift = beta - mean * bn_scale                            # (mip, 1)
    w1f = (bn_scale * w1).astype(jnp.float32)                    # (mip, C)
    b1f = (bn_scale * b1 + bn_shift).astype(jnp.float32)         # (mip, 1)

    # ---- stack the two gate convs into a single matmul ----
    whw = jnp.concatenate([wh, ww], axis=0).astype(jnp.float32)  # (2*Cout, mip)
    bhw = jnp.concatenate([bh, bw], axis=0).astype(jnp.float32)  # (2*Cout, 1)

    # ---- constant matrices: pooling+concat and gate broadcast, as matmuls ----
    HW = H * W
    s = jnp.arange(HW)
    h_idx = s // W
    w_idx = s % W
    P = jnp.zeros((HW, H + W), jnp.float32)
    P = P.at[s, h_idx].set(1.0 / W)        # mean over W  -> first H columns
    P = P.at[s, H + w_idx].set(1.0 / H)    # mean over H  -> last W columns
    Eh = (h_idx[None, :] == jnp.arange(H)[:, None]).astype(jnp.float32)  # (H, HW)
    Ew = (w_idx[None, :] == jnp.arange(W)[:, None]).astype(jnp.float32)  # (W, HW)

    # ---- lane-dense layout: put H*W on the lane axis ----
    x2 = x.reshape(N, C, HW)

    itemsize = jnp.dtype(x.dtype).itemsize
    img_bytes = C * HW * itemsize
    nb = _pick_images_per_block(N, img_bytes)
    grid = (N // nb,)

    # VMEM budget: double-buffered in/out blocks + weights + temp slack.
    block_bytes = nb * img_bytes
    weight_bytes = sum(int(a.size) * 4 for a in (P, Eh, Ew, w1f, b1f, whw, bhw))
    est = 8 * block_bytes + 2 * weight_bytes
    vmem_limit = int(min(64 * 2 ** 20, max(32 * 2 ** 20, 2 * est)))  # v7x-safe cap

    def full_spec(arr):
        nd = arr.ndim
        return pl.BlockSpec(arr.shape, lambda n, _nd=nd: (0,) * _nd)

    kernel = functools.partial(_coord_attn_kernel, nb=nb, H=H, W=W, Cout=Cout)

    out2 = pl.pallas_call(
        kernel,
        out_shape=jax.ShapeDtypeStruct((N, C, HW), x.dtype),
        grid_spec=pltpu.PrefetchScalarGridSpec(
            num_scalar_prefetch=0,
            grid=grid,
            in_specs=[
                pl.BlockSpec((nb, C, HW), lambda n: (n, 0, 0)),   # x (lane-dense)
                full_spec(P), full_spec(Eh), full_spec(Ew),
                full_spec(w1f), full_spec(b1f),
                full_spec(whw), full_spec(bhw),
            ],
            out_specs=pl.BlockSpec((nb, C, HW), lambda n: (n, 0, 0)),
        ),
        compiler_params=pltpu.CompilerParams(
            dimension_semantics=("parallel",),
            vmem_limit_bytes=vmem_limit),
    )(x2, P, Eh, Ew, w1f, b1f, whw, bhw)

    return out2.reshape(N, C, H, W)


def make_params(key, in_channels, out_channels, reduction=32, eps=1e-5):
    mip = max(8, in_channels // reduction)
    k = jax.random.split(key, 8)
    w1 = 0.1 * jax.random.normal(k[0], (mip, in_channels), jnp.float32)
    b1 = 0.1 * jax.random.normal(k[1], (mip, 1), jnp.float32)
    gamma = 1.0 + 0.1 * jax.random.normal(k[2], (mip, 1), jnp.float32)
    beta = 0.1 * jax.random.normal(k[3], (mip, 1), jnp.float32)
    running_mean = 0.05 * jax.random.normal(k[4], (mip, 1), jnp.float32)
    running_var = 1.0 + 0.1 * jax.random.uniform(k[5], (mip, 1), jnp.float32)
    wh = 0.1 * jax.random.normal(k[6], (out_channels, mip), jnp.float32)
    bh = jnp.zeros((out_channels, 1), jnp.float32)
    ww = 0.1 * jax.random.normal(k[7], (out_channels, mip), jnp.float32)
    bw = jnp.zeros((out_channels, 1), jnp.float32)
    return dict(w1=w1, b1=b1, gamma=gamma, beta=beta,
                running_mean=running_mean, running_var=running_var,
                wh=wh, bh=bh, ww=ww, bw=bw, eps=eps)


def reference(x, p):
    """Pure-JAX reference of the same forward (eval-mode BatchNorm)."""
    eps = p["eps"]
    x_h = jnp.mean(x, axis=3)                               # (N, C, H)
    x_w = jnp.mean(x, axis=2)                               # (N, C, W)
    y = jnp.concatenate([x_h, x_w], axis=2)                 # (N, C, H+W)
    y = jnp.einsum("mc,ncs->nms", p["w1"], y) + p["b1"][None]
    scale = p["gamma"] / jnp.sqrt(p["running_var"] + eps)
    shift = p["beta"] - p["running_mean"] * scale
    y = y * scale[None] + shift[None]
    y = jnp.maximum(y, 0.0)
    H = x.shape[2]
    y_h, y_w = y[:, :, :H], y[:, :, H:]
    a_h = jax.nn.sigmoid(jnp.einsum("om,nms->nos", p["wh"], y_h) + p["bh"][None])
    a_w = jax.nn.sigmoid(jnp.einsum("om,nms->nos", p["ww"], y_w) + p["bw"][None])
    return x * a_h[:, :, :, None] * a_w[:, :, None, :]


if __name__ == "__main__":
    N, C, H, W = 2, 4, 16, 16
    key = jax.random.PRNGKey(0)
    kx, kp = jax.random.split(key)
    x = jax.random.normal(kx, (N, C, H, W), jnp.float32)
    params = make_params(kp, in_channels=C, out_channels=C, reduction=32)

    out = coordinate_attention(x, params)
    out = jax.block_until_ready(out)

    ref = reference(x, params)
    assert out.shape == (N, C, H, W)
    # Tolerance sized for f32 matmuls routed through the MXU.
    assert jnp.allclose(out, ref, atol=1e-4, rtol=1e-4)
    print("KERNEL_OK")
</pallas_src>

<mosaic_0001>
module attributes {stable_mosaic.version = 11 : i64} {
  func.func @_coord_attn_kernel(%arg0: i32, %arg1: memref<2x4x256xf32, #tpu.memory_space<vmem>>, %arg2: memref<256x32xf32, #tpu.memory_space<vmem>>, %arg3: memref<16x256xf32, #tpu.memory_space<vmem>>, %arg4: memref<16x256xf32, #tpu.memory_space<vmem>>, %arg5: memref<8x4xf32, #tpu.memory_space<vmem>>, %arg6: memref<8x1xf32, #tpu.memory_space<vmem>>, %arg7: memref<8x8xf32, #tpu.memory_space<vmem>>, %arg8: memref<8x1xf32, #tpu.memory_space<vmem>>, %arg9: memref<2x4x256xf32, #tpu.memory_space<vmem>>) attributes {dimension_semantics = [#tpu.dimension_semantics<parallel>], iteration_bounds = array<i64: 1>, scalar_prefetch = 0 : i64, scratch_operands = 0 : i64, tpu.core_type = #tpu.core_type<tc>, window_params = [{transform_indices = @transform_0, window_bounds = array<i64: 2, 4, 256>}, {pipeline_mode = #tpu.pipeline_mode<synchronous>, transform_indices = @transform_1, window_bounds = array<i64: 256, 32>}, {pipeline_mode = #tpu.pipeline_mode<synchronous>, transform_indices = @transform_2, window_bounds = array<i64: 16, 256>}, {pipeline_mode = #tpu.pipeline_mode<synchronous>, transform_indices = @transform_3, window_bounds = array<i64: 16, 256>}, {pipeline_mode = #tpu.pipeline_mode<synchronous>, transform_indices = @transform_4, window_bounds = array<i64: 8, 4>}, {pipeline_mode = #tpu.pipeline_mode<synchronous>, transform_indices = @transform_5, window_bounds = array<i64: 8, 1>}, {pipeline_mode = #tpu.pipeline_mode<synchronous>, transform_indices = @transform_6, window_bounds = array<i64: 8, 8>}, {pipeline_mode = #tpu.pipeline_mode<synchronous>, transform_indices = @transform_7, window_bounds = array<i64: 8, 1>}, {transform_indices = @transform_8, window_bounds = array<i64: 2, 4, 256>}]} {
    %c0 = arith.constant 0 : index
    %c0_0 = arith.constant 0 : index
    %0 = vector.load %arg2[%c0, %c0_0] : memref<256x32xf32, #tpu.memory_space<vmem>>, vector<256x32xf32>
    %c0_1 = arith.constant 0 : index
    %c0_2 = arith.constant 0 : index
    %1 = vector.load %arg3[%c0_1, %c0_2] : memref<16x256xf32, #tpu.memory_space<vmem>>, vector<16x256xf32>
    %c0_3 = arith.constant 0 : index
    %c0_4 = arith.constant 0 : index
    %2 = vector.load %arg4[%c0_3, %c0_4] : memref<16x256xf32, #tpu.memory_space<vmem>>, vector<16x256xf32>
    %c0_5 = arith.constant 0 : index
    %c0_6 = arith.constant 0 : index
    %3 = vector.load %arg5[%c0_5, %c0_6] : memref<8x4xf32, #tpu.memory_space<vmem>>, vector<8x4xf32>
    %c0_7 = arith.constant 0 : index
    %c0_8 = arith.constant 0 : index
    %4 = vector.load %arg6[%c0_7, %c0_8] : memref<8x1xf32, #tpu.memory_space<vmem>>, vector<8x1xf32>
    %c0_9 = arith.constant 0 : index
    %c0_10 = arith.constant 0 : index
    %5 = vector.load %arg7[%c0_9, %c0_10] : memref<8x8xf32, #tpu.memory_space<vmem>>, vector<8x8xf32>
    %c0_11 = arith.constant 0 : index
    %c0_12 = arith.constant 0 : index
    %6 = vector.load %arg8[%c0_11, %c0_12] : memref<8x1xf32, #tpu.memory_space<vmem>>, vector<8x1xf32>
    %c0_13 = arith.constant 0 : index
    %c0_14 = arith.constant 0 : index
    %c0_15 = arith.constant 0 : index
    %7 = vector.load %arg1[%c0_13, %c0_14, %c0_15] : memref<2x4x256xf32, #tpu.memory_space<vmem>>, vector<1x4x256xf32>
    %8 = vector.shape_cast %7 : vector<1x4x256xf32> to vector<4x256xf32>
    %cst = arith.constant dense<0.000000e+00> : vector<4x32xf32>
    %9 = tpu.matmul %8, %0, %cst {dimension_numbers = #tpu.dot_dimension_numbers<[1], [0], [0], [1], [0, 0, 1, 1], [], []>} : vector<4x256xf32>, vector<256x32xf32>, vector<4x32xf32> -> vector<4x32xf32>
    %cst_16 = arith.constant dense<0.000000e+00> : vector<8x32xf32>
    %10 = tpu.matmul %3, %9, %cst_16 {dimension_numbers = #tpu.dot_dimension_numbers<[1], [0], [0], [1], [0, 0, 1, 1], [], []>} : vector<8x4xf32>, vector<4x32xf32>, vector<8x32xf32> -> vector<8x32xf32>
    %11 = vector.broadcast %4 : vector<8x1xf32> to vector<8x32xf32>
    %12 = arith.addf %10, %11 : vector<8x32xf32>
    %cst_17 = arith.constant 0.000000e+00 : f32
    %13 = vector.broadcast %cst_17 : f32 to vector<8x32xf32>
    %14 = arith.maximumf %12, %13 : vector<8x32xf32>
    %cst_18 = arith.constant dense<0.000000e+00> : vector<8x32xf32>
    %15 = tpu.matmul %5, %14, %cst_18 {dimension_numbers = #tpu.dot_dimension_numbers<[1], [0], [0], [1], [0, 0, 1, 1], [], []>} : vector<8x8xf32>, vector<8x32xf32>, vector<8x32xf32> -> vector<8x32xf32>
    %16 = vector.broadcast %6 : vector<8x1xf32> to vector<8x32xf32>
    %17 = arith.addf %15, %16 : vector<8x32xf32>
    %18 = arith.negf %17 : vector<8x32xf32>
    %19 = math.exp %18 : vector<8x32xf32>
    %cst_19 = arith.constant 1.000000e+00 : f32
    %20 = vector.broadcast %cst_19 : f32 to vector<8x32xf32>
    %21 = arith.addf %20, %19 : vector<8x32xf32>
    %22 = arith.divf %20, %21 : vector<8x32xf32>
    %23 = vector.extract_strided_slice %22 {offsets = [0, 0], sizes = [4, 16], strides = [1, 1]} : vector<8x32xf32> to vector<4x16xf32>
    %24 = vector.extract_strided_slice %22 {offsets = [4, 16], sizes = [4, 16], strides = [1, 1]} : vector<8x32xf32> to vector<4x16xf32>
    %cst_20 = arith.constant dense<0.000000e+00> : vector<4x256xf32>
    %25 = tpu.matmul %23, %1, %cst_20 {dimension_numbers = #tpu.dot_dimension_numbers<[1], [0], [0], [1], [0, 0, 1, 1], [], []>} : vector<4x16xf32>, vector<16x256xf32>, vector<4x256xf32> -> vector<4x256xf32>
    %cst_21 = arith.constant dense<0.000000e+00> : vector<4x256xf32>
    %26 = tpu.matmul %24, %2, %cst_21 {dimension_numbers = #tpu.dot_dimension_numbers<[1], [0], [0], [1], [0, 0, 1, 1], [], []>} : vector<4x16xf32>, vector<16x256xf32>, vector<4x256xf32> -> vector<4x256xf32>
    %27 = arith.mulf %8, %25 : vector<4x256xf32>
    %28 = arith.mulf %27, %26 : vector<4x256xf32>
    %c0_22 = arith.constant 0 : index
    %c0_23 = arith.constant 0 : index
    %c0_24 = arith.constant 0 : index
    %29 = vector.load %arg9[%c0_22, %c0_23, %c0_24] : memref<2x4x256xf32, #tpu.memory_space<vmem>>, vector<1x4x256xf32>
    %30 = vector.shape_cast %29 : vector<1x4x256xf32> to vector<4x256xf32>
    %31 = vector.shape_cast %28 : vector<4x256xf32> to vector<1x4x256xf32>
    tpu.vector_store %arg9[%c0_22, %c0_23, %c0_24], %31 {strides = array<i32>} : memref<2x4x256xf32, #tpu.memory_space<vmem>>, vector<1x4x256xf32>,
    %c1 = arith.constant 1 : index
    %c0_25 = arith.constant 0 : index
    %c0_26 = arith.constant 0 : index
    %32 = vector.load %arg1[%c1, %c0_25, %c0_26] : memref<2x4x256xf32, #tpu.memory_space<vmem>>, vector<1x4x256xf32>
    %33 = vector.shape_cast %32 : vector<1x4x256xf32> to vector<4x256xf32>
    %cst_27 = arith.constant dense<0.000000e+00> : vector<4x32xf32>
    %34 = tpu.matmul %33, %0, %cst_27 {dimension_numbers = #tpu.dot_dimension_numbers<[1], [0], [0], [1], [0, 0, 1, 1], [], []>} : vector<4x256xf32>, vector<256x32xf32>, vector<4x32xf32> -> vector<4x32xf32>
    %cst_28 = arith.constant dense<0.000000e+00> : vector<8x32xf32>
    %35 = tpu.matmul %3, %34, %cst_28 {dimension_numbers = #tpu.dot_dimension_numbers<[1], [0], [0], [1], [0, 0, 1, 1], [], []>} : vector<8x4xf32>, vector<4x32xf32>, vector<8x32xf32> -> vector<8x32xf32>
    %36 = vector.broadcast %4 : vector<8x1xf32> to vector<8x32xf32>
    %37 = arith.addf %35, %36 : vector<8x32xf32>
    %cst_29 = arith.constant 0.000000e+00 : f32
    %38 = vector.broadcast %cst_29 : f32 to vector<8x32xf32>
    %39 = arith.maximumf %37, %38 : vector<8x32xf32>
    %cst_30 = arith.constant dense<0.000000e+00> : vector<8x32xf32>
    %40 = tpu.matmul %5, %39, %cst_30 {dimension_numbers = #tpu.dot_dimension_numbers<[1], [0], [0], [1], [0, 0, 1, 1], [], []>} : vector<8x8xf32>, vector<8x32xf32>, vector<8x32xf32> -> vector<8x32xf32>
    %41 = vector.broadcast %6 : vector<8x1xf32> to vector<8x32xf32>
    %42 = arith.addf %40, %41 : vector<8x32xf32>
    %43 = arith.negf %42 : vector<8x32xf32>
    %44 = math.exp %43 : vector<8x32xf32>
    %cst_31 = arith.constant 1.000000e+00 : f32
    %45 = vector.broadcast %cst_31 : f32 to vector<8x32xf32>
    %46 = arith.addf %45, %44 : vector<8x32xf32>
    %47 = arith.divf %45, %46 : vector<8x32xf32>
    %48 = vector.extract_strided_slice %47 {offsets = [0, 0], sizes = [4, 16], strides = [1, 1]} : vector<8x32xf32> to vector<4x16xf32>
    %49 = vector.extract_strided_slice %47 {offsets = [4, 16], sizes = [4, 16], strides = [1, 1]} : vector<8x32xf32> to vector<4x16xf32>
    %cst_32 = arith.constant dense<0.000000e+00> : vector<4x256xf32>
    %50 = tpu.matmul %48, %1, %cst_32 {dimension_numbers = #tpu.dot_dimension_numbers<[1], [0], [0], [1], [0, 0, 1, 1], [], []>} : vector<4x16xf32>, vector<16x256xf32>, vector<4x256xf32> -> vector<4x256xf32>
    %cst_33 = arith.constant dense<0.000000e+00> : vector<4x256xf32>
    %51 = tpu.matmul %49, %2, %cst_33 {dimension_numbers = #tpu.dot_dimension_numbers<[1], [0], [0], [1], [0, 0, 1, 1], [], []>} : vector<4x16xf32>, vector<16x256xf32>, vector<4x256xf32> -> vector<4x256xf32>
    %52 = arith.mulf %33, %50 : vector<4x256xf32>
    %53 = arith.mulf %52, %51 : vector<4x256xf32>
    %c1_34 = arith.constant 1 : index
    %c0_35 = arith.constant 0 : index
    %c0_36 = arith.constant 0 : index
    %54 = vector.load %arg9[%c1_34, %c0_35, %c0_36] : memref<2x4x256xf32, #tpu.memory_space<vmem>>, vector<1x4x256xf32>
    %55 = vector.shape_cast %54 : vector<1x4x256xf32> to vector<4x256xf32>
    %56 = vector.shape_cast %53 : vector<4x256xf32> to vector<1x4x256xf32>
    tpu.vector_store %arg9[%c1_34, %c0_35, %c0_36], %56 {strides = array<i32>} : memref<2x4x256xf32, #tpu.memory_space<vmem>>, vector<1x4x256xf32>,
    return
  }
  func.func @transform_0(%arg0: i32) -> (i32, i32, i32) {
    %c0_i32 = arith.constant 0 : i32
    %c0_i32_0 = arith.constant 0 : i32
    %c0_i32_1 = arith.constant 0 : i32
    return %arg0, %c0_i32, %c0_i32_0 : i32, i32, i32
  }
  func.func @transform_1(%arg0: i32) -> (i32, i32) {
    %c0_i32 = arith.constant 0 : i32
    %c0_i32_0 = arith.constant 0 : i32
    %c0_i32_1 = arith.constant 0 : i32
    return %c0_i32, %c0_i32_0 : i32, i32
  }
  func.func @transform_2(%arg0: i32) -> (i32, i32) {
    %c0_i32 = arith.constant 0 : i32
    %c0_i32_0 = arith.constant 0 : i32
    %c0_i32_1 = arith.constant 0 : i32
    return %c0_i32, %c0_i32_0 : i32, i32
  }
  func.func @transform_3(%arg0: i32) -> (i32, i32) {
    %c0_i32 = arith.constant 0 : i32
    %c0_i32_0 = arith.constant 0 : i32
    %c0_i32_1 = arith.constant 0 : i32
    return %c0_i32, %c0_i32_0 : i32, i32
  }
  func.func @transform_4(%arg0: i32) -> (i32, i32) {
    %c0_i32 = arith.constant 0 : i32
    %c0_i32_0 = arith.constant 0 : i32
    %c0_i32_1 = arith.constant 0 : i32
    return %c0_i32, %c0_i32_0 : i32, i32
  }
  func.func @transform_5(%arg0: i32) -> (i32, i32) {
    %c0_i32 = arith.constant 0 : i32
    %c0_i32_0 = arith.constant 0 : i32
    %c0_i32_1 = arith.constant 0 : i32
    return %c0_i32, %c0_i32_0 : i32, i32
  }
  func.func @transform_6(%arg0: i32) -> (i32, i32) {
    %c0_i32 = arith.constant 0 : i32
    %c0_i32_0 = arith.constant 0 : i32
    %c0_i32_1 = arith.constant 0 : i32
    return %c0_i32, %c0_i32_0 : i32, i32
  }
  func.func @transform_7(%arg0: i32) -> (i32, i32) {
    %c0_i32 = arith.constant 0 : i32
    %c0_i32_0 = arith.constant 0 : i32
    %c0_i32_1 = arith.constant 0 : i32
    return %c0_i32, %c0_i32_0 : i32, i32
  }
  func.func @transform_8(%arg0: i32) -> (i32, i32, i32) {
    %c0_i32 = arith.constant 0 : i32
    %c0_i32_0 = arith.constant 0 : i32
    %c0_i32_1 = arith.constant 0 : i32
    return %arg0, %c0_i32, %c0_i32_0 : i32, i32, i32
  }
}

</mosaic_0001>

<bundles_post_ra>
// kernel: tpu_custom_call.1
= control target key start
LH: loop header
LB: loop body
LE: loop exit
PB: predicated region body
PF: predicated region fallthrough
CT: control target
= control target key end

     0   :  { %s1442_s0 = inlined_call_operand.vmem [shape: f32[2,4,256], index: 0, kind: input, shape index: {}]   ;;  %s1443_s1 = inlined_call_operand.vmem [shape: f32[256,32], index: 1, kind: input, shape index: {}]   ;;  %s1444_s2 = inlined_call_operand.vmem [shape: f32[16,256], index: 2, kind: input, shape index: {}]   ;;  %s1445_s3 = inlined_call_operand.vmem [shape: f32[16,256], index: 3, kind: input, shape index: {}]   ;;  %s1446_s4 = inlined_call_operand.vmem [shape: f32[8,4], index: 4, kind: input, shape index: {}]   ;;  %s1447_s5 = inlined_call_operand.vmem [shape: f32[8,1], index: 5, kind: input, shape index: {}]   ;;  %s1448_s6 = inlined_call_operand.vmem [shape: f32[8,8], index: 6, kind: input, shape index: {}]   ;;  %s1449_s7 = inlined_call_operand.vmem [shape: f32[8,1], index: 7, kind: input, shape index: {}]   ;;  %s1450_s8 = inlined_call_operand.hbm [shape: f32[2,4,256], index: 8, kind: output, shape index: {}]  }
   0x1   :  { %v1088_v0 = vld [vmem:[%s1443_s1 + $0xf8] sm:$0xff]  ;;  %v1098_v2 = vld [vmem:[%s1443_s1 + $0xf0] sm:$0xff]  ;;  %v1110_v4 = vld [vmem:[%s1443_s1 + $0xe8] sm:$0xff] }
   0x2   :  { %v1093_v1 = vld [vmem:[%s1443_s1 + $0x78] sm:$0xff]  ;;  %895 = vmatprep.subr.mxu0 %v1088_v0  ;;  %v1104_v3 = vld [vmem:[%s1443_s1 + $0x70] sm:$0xff]  ;;  %v1116_v5 = vld [vmem:[%s1443_s1 + $0x68] sm:$0xff] }
   0x3   :  { %896 = vmatpush3.msra.mxu0 %v1093_v1  ;;  %v1122_v6 = vld [vmem:[%s1443_s1 + $0xe0] sm:$0xff]  ;;  %v1134_v8 = vld [vmem:[%s1443_s1 + $0xd8] sm:$0xff]  ;;  %v1146_v10 = vld [vmem:[%s1443_s1 + $0xd0] sm:$0xff] }
   0x4   :  { %897 = vmatprep.subr.mxu0 %v1098_v2  ;;  %v1128_v7 = vld [vmem:[%s1443_s1 + $0x60] sm:$0xff]  ;;  %v1140_v9 = vld [vmem:[%s1443_s1 + $0x58] sm:$0xff]  ;;  %v1152_v11 = vld [vmem:[%s1443_s1 + $0x50] sm:$0xff] }
   0x5   :  { %898 = vmatpush3.msra.mxu0 %v1104_v3  ;;  %v1158_v12 = vld [vmem:[%s1443_s1 + $0xc8] sm:$0xff]  ;;  %v1163_v13 = vld [vmem:[%s1442_s0] sm:$0xff] }
   0x6   :  { %899 = vmatprep.subr.mxu0 %v1110_v4  ;;  %v1169_v14 = vld [vmem:[%s1443_s1 + $0x48] sm:$0xff]  ;;  %v76_v15 = vcombine.high %v1163_v13, %v1163_v13 }
   0x7   :  { %900 = vmatpush3.msra.mxu0 %v1116_v5 }
   0x8   :  { %901 = vmatprep.subr.mxu0 %v1122_v6 }
   0x9   :  { %902 = vmatpush3.msra.mxu0 %v1128_v7 }
   0xa   :  { %903 = vmatprep.subr.mxu0 %v1134_v8 }
   0xb   :  { %904 = vmatpush3.msra.mxu0 %v1140_v9 }
   0xc   :  { %905 = vmatprep.subr.mxu0 %v1146_v10 }
   0xd   :  { %13 = vsyncpa [#allocation3], 0  ;;  %906 = vmatpush3.msra.mxu0 %v1152_v11  ;;  %v1177_v16 = vld [vmem:[%s1443_s1 + $0xc0] sm:$0xff]  ;;  %142 = vmatprep.mubr.f32.mxu0 %v76_v15  ;;  %v1189_v18 = vld [vmem:[%s1443_s1 + $0xb8] sm:$0xff]  ;;  %v1033_v34 = vmov 0.0   ;;  %vm1034_vm0 = vmmov 0  }
   0xe   :  { %907 = vmatprep.subr.mxu0 %v1158_v12  ;;  %v1183_v17 = vld [vmem:[%s1443_s1 + $0x40] sm:$0xff]  ;;  %v1195_v19 = vld [vmem:[%s1443_s1 + $0x38] sm:$0xff]  ;;  %v1201_v20 = vld [vmem:[%s1443_s1 + $0xb0] sm:$0xff]  ;;  %973 = vmatprep.subr.mxu1 %v1033_v34  ;;  %v1035_v36 = vmov 0   ;;  %vm157_vm1 = vcmask 1043456   ;;  %vm153_vm2 = vcmask 31744  }
   0xf   :  { %908 = vmatpush3.msra.mxu0 %v1169_v14  ;;  %v1207_v21 = vld [vmem:[%s1443_s1 + $0x30] sm:$0xff]  ;;  %v1213_v22 = vld [vmem:[%s1443_s1 + $0xa8] sm:$0xff]  ;;  %v1225_v24 = vld [vmem:[%s1443_s1 + $0xa0] sm:$0xff]  ;;  %975 = vmatprep.mubr.msk.f32.mxu1 %vm1034_vm0, %v1033_v34  ;;  %vm237_vm3 = vcmask 64512   ;;  %vm317_vm4 = vcmask 130048   ;;  %s1036_s23 = smov 112  }
  0x10   :  { %909 = vmatprep.subr.mxu0 %v1177_v16  ;;  %v1219_v23 = vld [vmem:[%s1443_s1 + $0x28] sm:$0xff]  ;;  %v1231_v25 = vld [vmem:[%s1443_s1 + $0x20] sm:$0xff]  ;;  %v1237_v26 = vld [vmem:[%s1443_s1 + $0x98] sm:$0xff]  ;;  %1000 = vset.pattern.permute.xlu0 %v1035_v36 }
  0x11   :  { %910 = vmatpush3.msra.mxu0 %v1183_v17  ;;  %v1243_v27 = vld [vmem:[%s1443_s1 + $0x18] sm:$0xff]  ;;  %v1249_v28 = vld [vmem:[%s1443_s1 + $0x90] sm:$0xff]  ;;  %v1261_v30 = vld [vmem:[%s1443_s1 + $0x88] sm:$0xff] }
  0x12   :  { %911 = vmatprep.subr.mxu0 %v1189_v18  ;;  %v1255_v29 = vld [vmem:[%s1443_s1 + $0x10] sm:$0xff]  ;;  %v1267_v31 = vld [vmem:[%s1443_s1 + $0x8] sm:$0xff]  ;;  %v1273_v32 = vld [vmem:[%s1443_s1 + $0x80] sm:$0xff] }
  0x13   :  { %912 = vmatpush3.msra.mxu0 %v1195_v19  ;;  %v1279_v33 = vld [vmem:[%s1443_s1] sm:$0xff]  ;;  %v1322_v48 = vld [vmem:[%s1444_s2 + $0x18] sm:$0xff]  ;;  %v1327_v49 = vld [vmem:[%s1444_s2 + $0x10] sm:$0xff] }
  0x14   :  { %913 = vmatprep.subr.mxu0 %v1201_v20  ;;  %v71_v35 = vld [vmem:[%s1447_s5] sm:$0xff]  ;;  %v1332_v50 = vld [vmem:[%s1444_s2 + $0x8] sm:$0xff]  ;;  %v1346_v52 = vld [vmem:[%s1445_s3 + $0x18] sm:$0xff] }
  0x15   :  { %914 = vmatpush3.msra.mxu0 %v1207_v21  ;;  %150 = vperm.xlu0 %1000, %v71_v35   ;;  %v73_v37 = vld [vmem:[%s1449_s7] sm:$0xff]  ;;  %v1355_v60 = vld [vmem:[%s1445_s3 + $0x10] sm:$0xff]  ;;  %v1360_v62 = vld [vmem:[%s1445_s3 + $0x8] sm:$0xff] }
  0x16   :  { %915 = vmatprep.subr.mxu0 %v1213_v22  ;;  %v1300_v41 = vld [vmem:[%s1446_s4] sm:$0xff]  ;;  %v1377_v35 = vld [vmem:[%s1442_s0 + $0x8] sm:$0xff]  ;;  %s1037_s0 = smov [#allocation2]  }
  0x17   :  { %916 = vmatpush3.msra.mxu0 %v1219_v23  ;;  %v1314_v47 = vld [vmem:[%s1448_s6] sm:$0xff]  ;;  %v482_v36 = vcombine.high %v1377_v35, %v1377_v35 }
  0x18   :  { %917 = vmatprep.subr.mxu0 %v1225_v24  ;;  %v1338_v51 = vld [vmem:[%s1444_s2] sm:$0xff] }
  0x19   :  { %918 = vmatpush3.msra.mxu0 %v1231_v25  ;;  %234 = vperm.xlu0 %1000, %v73_v37   ;;  %v1366_v15 = vld [vmem:[%s1445_s3] sm:$0xff]  ;;  %s871_s3 = sshll.u32 %s1037_s0, 4  ;;  %s872_s3 = int_to_ptr.vmem [resolvable:$true] %s871_s3 }
  0x1a   :  { %919 = vmatprep.subr.mxu0 %v1237_v26  ;;  %s1011_s26 = scalar_lea.vmem %s872_s3, 256  ;;  %p1016_p1 = scmp.lt.s32.totalorder %s872_s3, %s872_s3 }
  0x1b   :  { %920 = vmatpush3.msra.mxu0 %v1243_v27  ;;  %p1012_p0 = scmp.ne.s32.totalorder %s872_s3, %s1011_s26  ;;  %p1017_p2 = scmp.lt.s32.totalorder %s1011_s26, %s1011_s26 }
  0x1c   :  { %921 = vmatprep.subr.mxu0 %v1249_v28 }
  0x1d   :  { %922 = vmatpush3.msra.mxu0 %v1255_v29  ;;  %p1018_p3 = por %p1017_p2, %p1016_p1 }
  0x1e   :  { %923 = vmatprep.subr.mxu0 %v1261_v30 }
  0x1f   :  { %924 = vmatpush3.msra.mxu0 %v1267_v31  ;;  %p1019_p4 = pnand %p1018_p3, %p1012_p0 }
  0x20   :  { %925 = vmatprep.subr.mxu0 %v1273_v32 }
  0x21   :  { %926 = vmatpush3.msra.mxu0 %v1279_v33 }
  0x22   :  { %143 = vmatmul.mubr.f32.vlgmr.msra.gmra.mxu0 %v1163_v13  ;;  %983 = vmatprep.subr.mxu0 %v1033_v34 }
  0x23   :  { %985 = vmatprep.mubr.msk.f32.mxu0 %vm1034_vm0, %v1033_v34 }
  0x90   :  { %v1308_v42 = vpop.permute.xlu0 %150 }
  0x94   :  { %v1349_v53 = vpop.permute.xlu0 %234 }
  0xe2   :  { %v927_v38 = vpop.f32.mrf.mxu0 }
  0xe4   :  { %v928_v39 = vpop.f32.mrf.mxu0 }
  0xe5   :  { %v929_v40 = vadd.f32 %v928_v39, %v927_v38 }
  0xe7   :  { %974 = vmatpush3.msk.msra.mxu1 %vm157_vm1, %v929_v40 }
  0xe8   :  { %976 = vmatmul.mubr.msk.f32.vlgmr.msra.gmra.mxu1 %vm153_vm2, %v1300_v41  ;;  %978 = vmatprep.subr.mxu1 %v1033_v34 }
  0xe9   :  { %980 = vmatprep.mubr.msk.f32.mxu1 %vm1034_vm0, %v1033_v34 }
 0x1a8   :  { %v227_v43 = vpop.f32.mrf.mxu1 }
 0x1a9   :  { %v228_v44 = vadd.f32 %v227_v43, %v1308_v42 }
 0x1aa   :  { %v977_v45 = vpop.f32.mrf.mxu1 }
 0x1ab   :  { %v231_v46 = vmax.f32 %v228_v44, 0.0 }
 0x1ad   :  { %979 = vmatpush3.msra.mxu1 %v231_v46 }
 0x1ae   :  { %981 = vmatmul.mubr.msk.f32.vlgmr.msra.gmra.mxu1 %vm237_vm3, %v1314_v47  ;;  %349 = vmatprep.subr.mxu1 %v1322_v48 }
 0x1af   :  { %385 = vmatprep.mubr.f32.mxu1 %v1033_v34  ;;  %350 = vmatpush1.msra.mxu1 %v1327_v49 }
 0x1b0   :  { %351 = vmatprep.subr.mxu1 %v1332_v50 }
 0x1b1   :  { %352 = vmatpush1.msra.mxu1 %v1338_v51 }
 0x1b2   :  { %425 = vmatprep.subr.mxu1 %v1346_v52 }
 0x26e   :  { %v307_v54 = vpop.f32.mrf.mxu1 }
 0x26f   :  { %v308_v55 = vadd.f32 %v307_v54, %v1349_v53 }
 0x270   :  { %v982_v56 = vpop.f32.mrf.mxu1 }
 0x271   :  { %v885_v57 = vmul.f32 -1.442695, %v308_v55 }
 0x273   :  { %1003 = vpow2.f32 %v885_v57 }
 0x280   :  { %v1004_v58 = vpop.eup %1003 }
 0x281   :  { %v314_v59 = vadd.f32 1.0, %v1004_v58 }
 0x283   :  { %1005 = vrcp.f32 %v314_v59 }
 0x290   :  { %v1006_v61 = vpop.eup %1005 }
 0x291   :  { %886 = vmatmul.mubr.msk.f32.vlgmr.msra.gmra.mxu1 %vm317_vm4, %v1006_v61  ;;  %v392_v63 = vrot.slane %v1006_v61, 4 }
 0x292   :  { %426 = vmatpush1.msra.mxu1 %v1355_v60  ;;  %461 = vmatprep.mubr.f32.mxu1 %v1033_v34 }
 0x293   :  { %393 = vrot.lane.b32.xlu1 %v392_v63, %s1036_s23  ;;  %427 = vmatprep.subr.mxu1 %v1360_v62 }
 0x294   :  { %428 = vmatpush1.msra.mxu1 %v1366_v15 }
 0x295   :  { %934 = vmatprep.subr.mxu1 %v1088_v0 }
 0x305   :  { %v394_v37 = vpop.permute.xlu1 %393 }
 0x306   :  { %887 = vmatmul.mubr.msk.f32.vlgmr.msra.gmra.mxu1 %vm317_vm4, %v394_v37 }
 0x307   :  { %935 = vmatpush3.msra.mxu1 %v1093_v1  ;;  %548 = vmatprep.mubr.f32.mxu1 %v482_v36 }
 0x308   :  { %936 = vmatprep.subr.mxu1 %v1098_v2 }
 0x309   :  { %937 = vmatpush3.msra.mxu1 %v1104_v3 }
 0x30a   :  { %938 = vmatprep.subr.mxu1 %v1110_v4 }
 0x30b   :  { %939 = vmatpush3.msra.mxu1 %v1116_v5 }
 0x30c   :  { %940 = vmatprep.subr.mxu1 %v1122_v6 }
 0x30d   :  { %941 = vmatpush3.msra.mxu1 %v1128_v7 }
 0x30e   :  { %942 = vmatprep.subr.mxu1 %v1134_v8 }
 0x30f   :  { %943 = vmatpush3.msra.mxu1 %v1140_v9 }
 0x310   :  { %944 = vmatprep.subr.mxu1 %v1146_v10 }
 0x311   :  { %945 = vmatpush3.msra.mxu1 %v1152_v11 }
 0x312   :  { %946 = vmatprep.subr.mxu1 %v1158_v12 }
 0x313   :  { %947 = vmatpush3.msra.mxu1 %v1169_v14 }
 0x314   :  { %948 = vmatprep.subr.mxu1 %v1177_v16 }
 0x315   :  { %949 = vmatpush3.msra.mxu1 %v1183_v17 }
 0x316   :  { %950 = vmatprep.subr.mxu1 %v1189_v18 }
 0x317   :  { %951 = vmatpush3.msra.mxu1 %v1195_v19 }
 0x318   :  { %952 = vmatprep.subr.mxu1 %v1201_v20 }
 0x319   :  { %953 = vmatpush3.msra.mxu1 %v1207_v21 }
 0x31a   :  { %954 = vmatprep.subr.mxu1 %v1213_v22 }
 0x31b   :  { %955 = vmatpush3.msra.mxu1 %v1219_v23 }
 0x31c   :  { %956 = vmatprep.subr.mxu1 %v1225_v24 }
 0x31d   :  { %957 = vmatpush3.msra.mxu1 %v1231_v25 }
 0x31e   :  { %958 = vmatprep.subr.mxu1 %v1237_v26 }
 0x31f   :  { %959 = vmatpush3.msra.mxu1 %v1243_v27 }
 0x320   :  { %960 = vmatprep.subr.mxu1 %v1249_v28 }
 0x321   :  { %961 = vmatpush3.msra.mxu1 %v1255_v29 }
 0x322   :  { %962 = vmatprep.subr.mxu1 %v1261_v30 }
 0x323   :  { %963 = vmatpush3.msra.mxu1 %v1267_v31 }
 0x324   :  { %964 = vmatprep.subr.mxu1 %v1273_v32 }
 0x325   :  { %965 = vmatpush3.msra.mxu1 %v1279_v33 }
 0x326   :  { %549 = vmatmul.mubr.f32.vlgmr.msra.gmra.mxu1 %v1377_v35 }
 0x351   :  { %v387_v0 = vpop.f32.mrf.mxu1 }
 0x353   :  { %v389_v1 = vpop.f32.mrf.mxu1 }
 0x354   :  { %v470_v2 = vcombine.low %v387_v0, %v389_v1 }
 0x356   :  { %v472_v5 = vmul.f32 %v470_v2, %v1163_v13 }
 0x3c6   :  { %v463_v3 = vpop.f32.mrf.mxu1 }
 0x3c8   :  { %v465_v4 = vpop.f32.mrf.mxu1 }
 0x3c9   :  { %v475_v6 = vcombine.low %v463_v3, %v465_v4 }
 0x3cb   :  { %v477_v7 = vmul.f32 %v475_v6, %v472_v5 }
 0x3cd   :  { %478 = vst [vmem:[#allocation2] sm:$0xff] %v477_v7 }
 0x3e6   :  { %v966_v8 = vpop.f32.mrf.mxu1 }
 0x3e8   :  { %v967_v9 = vpop.f32.mrf.mxu1 }
 0x3e9   :  { %v968_v10 = vadd.f32 %v967_v9, %v966_v8 }
 0x3eb   :  { %984 = vmatpush3.msk.msra.mxu0 %vm157_vm1, %v968_v10 }
 0x3ec   :  { %986 = vmatmul.mubr.msk.f32.vlgmr.msra.gmra.mxu0 %vm153_vm2, %v1300_v41  ;;  %988 = vmatprep.subr.mxu0 %v1033_v34 }
 0x3ed   :  { %990 = vmatprep.mubr.msk.f32.mxu0 %vm1034_vm0, %v1033_v34 }
 0x4ac   :  { %v623_v11 = vpop.f32.mrf.mxu0 }
 0x4ad   :  { %v624_v12 = vadd.f32 %v623_v11, %v1308_v42 }
 0x4ae   :  { %v987_v13 = vpop.f32.mrf.mxu0 }
 0x4af   :  { %v627_v14 = vmax.f32 %v624_v12, 0.0 }
 0x4b1   :  { %989 = vmatpush3.msra.mxu0 %v627_v14 }
 0x4b2   :  { %991 = vmatmul.mubr.msk.f32.vlgmr.msra.gmra.mxu0 %vm237_vm3, %v1314_v47  ;;  %735 = vmatprep.subr.mxu0 %v1322_v48 }
 0x4b3   :  { %736 = vmatpush1.msra.mxu0 %v1327_v49  ;;  %771 = vmatprep.mubr.f32.mxu0 %v1033_v34 }
 0x4b4   :  { %737 = vmatprep.subr.mxu0 %v1332_v50 }
 0x4b5   :  { %738 = vmatpush1.msra.mxu0 %v1338_v51 }
 0x4b6   :  { %811 = vmatprep.subr.mxu0 %v1346_v52 }
 0x572   :  { %v694_v16 = vpop.f32.mrf.mxu0 }
 0x573   :  { %v695_v17 = vadd.f32 %v694_v16, %v1349_v53 }
 0x574   :  { %v992_v18 = vpop.f32.mrf.mxu0 }
 0x575   :  { %v892_v19 = vmul.f32 -1.442695, %v695_v17 }
 0x577   :  { %1007 = vpow2.f32 %v892_v19 }
 0x584   :  { %v1008_v20 = vpop.eup %1007 }
 0x585   :  { %v701_v21 = vadd.f32 1.0, %v1008_v20 }
 0x587   :  { %1009 = vrcp.f32 %v701_v21 }
 0x594   :  { %v1010_v22 = vpop.eup %1009 }
 0x595   :  { %893 = vmatmul.mubr.msk.f32.vlgmr.msra.gmra.mxu0 %vm317_vm4, %v1010_v22  ;;  %v778_v23 = vrot.slane %v1010_v22, 4 }
 0x596   :  { %812 = vmatpush1.msra.mxu0 %v1355_v60  ;;  %847 = vmatprep.mubr.f32.mxu0 %v1033_v34 }
 0x597   :  { %779 = vrot.lane.b32.xlu1 %v778_v23, %s1036_s23  ;;  %813 = vmatprep.subr.mxu0 %v1360_v62 }
 0x598   :  { %814 = vmatpush1.msra.mxu0 %v1366_v15 }
 0x609   :  { %v780_v24 = vpop.permute.xlu1 %779 }
 0x60a   :  { %894 = vmatmul.mubr.msk.f32.vlgmr.msra.gmra.mxu0 %vm317_vm4, %v780_v24 }
 0x655   :  { %v773_v25 = vpop.f32.mrf.mxu0 }
 0x657   :  { %v775_v26 = vpop.f32.mrf.mxu0 }
 0x658   :  { %v856_v27 = vcombine.low %v773_v25, %v775_v26 }
 0x65a   :  { %v858_v30 = vmul.f32 %v1377_v35, %v856_v27 }
 0x6ca   :  { %v849_v28 = vpop.f32.mrf.mxu0 }
 0x6cc   :  { %v851_v29 = vpop.f32.mrf.mxu0 }
 0x6cd   :  { %v861_v31 = vcombine.low %v849_v28, %v851_v29 }
 0x6cf   :  { %v863_v32 = vmul.f32 %v861_v31, %v858_v30 }
 0x6d1   :  { %865 = vst [vmem:[#allocation2 + $0x8] sm:$0xff] %v863_v32 }
 0x6d2   :  { %1022 = shalt.err (!%p1019_p4)
}
 0x6d3   :  { %s1038_s1 = smov 128   ;;  %s1039_s27 = smov 8  }
 0x6d4   :  { %877 = dma.vmem_to_hbm [thread:$0]  %s872_s3, 256, %s1450_s8, [#allocation3], %s1038_s1, %s1038_s1, %s1039_s27  }
 0x6d5   :  { %1031 = dma.done.wait [#allocation3], 256  }
 0x6d6   :  { %1032 = vsyncadd [#allocation3], 4294967040 }
 0x6d7   :  { %881 = vsyncpa [#allocation3], 1 }

</bundles_post_ra>
